<compile_context>
chip_gen: v6e
topology: v6e:2x2x1
jax: 0.10.0
libtpu: 0.0.40
codegen_flags: <defaults>
</compile_context>

<pallas_src>
import math

import jax
import jax.numpy as jnp
import numpy as np
from jax import lax
from jax.experimental import pallas as pl
from jax.experimental.pallas import tpu as pltpu

NUM_GROUPS = 32
EPS = 1e-6


def self_attention_kernel(x_ref, wqkv_ref, wp_ref, gp_ref, vecs_ref, o_ref):
    _, c, l = x_ref.shape
    inv_cnt = 1.0 / float((c // NUM_GROUPS) * l)     # elements per (group, sample)

    x = x_ref[0]                       # (C, L)  f32
    wqkv = wqkv_ref[...]               # (3C, C) bf16 (q rows pre-scaled by C^-0.5)
    wp = wp_ref[...]                   # (C, C)  bf16
    gp = gp_ref[...]                   # (C, C)  f32 0/1 group-projection
    vecs = vecs_ref[...]               # (3C, 2) f32 packed per-channel vectors
    bqkv = vecs[:, 0:1]                # (3C, 1)  q/k/v biases (q bias pre-scaled)
    gamma = vecs[0:c, 1:2]             # (C, 1)
    beta = vecs[c:2 * c, 1:2]          # (C, 1)
    bp = vecs[2 * c:3 * c, 1:2]        # (C, 1)

    # ---- GroupNorm(32, eps=1e-6, affine); two-pass (centered) variance ----
    sum_x = jnp.sum(x, axis=1, keepdims=True)                              # (C, 1)
    mean = jnp.dot(gp, sum_x, preferred_element_type=jnp.float32) * inv_cnt
    xc = x - mean                                                          # (C, L)
    sum_xc2 = jnp.sum(xc * xc, axis=1, keepdims=True)                      # (C, 1)
    var = jnp.dot(gp, sum_xc2, preferred_element_type=jnp.float32) * inv_cnt
    inv = lax.rsqrt(var + EPS)
    h = xc * (inv * gamma) + beta                                          # (C, L) f32

    # ---- fused q/k/v 1x1 convs: one MXU push, bf16 operands, f32 accum ----
    # (On v6e/v7x the 256-wide MXU could take N = 2*L here by batching two
    #  elements along L; kept per-element to bound vreg pressure.)
    qkv = jnp.dot(wqkv, h.astype(jnp.bfloat16),
                  preferred_element_type=jnp.float32) + bqkv               # (3C, L)
    q = qkv[0:c].astype(jnp.bfloat16)                                      # sublane slices
    k = qkv[c:2 * c].astype(jnp.bfloat16)
    v = qkv[2 * c:3 * c].astype(jnp.bfloat16)

    # ---- attention scores in transposed orientation (no materialized .T) ----
    # sT[j, i] = sum_c k[c, j] * q[c, i]   (C^-0.5 already folded into q)
    sT = lax.dot_general(k, q, (((0,), (0,)), ((), ())),
                         preferred_element_type=jnp.float32)               # (L_j, L_i)
    mx = jnp.max(sT, axis=0, keepdims=True)                                # (1, L_i)
    eT = jnp.exp(sT - mx)                                                  # (L_j, L_i) f32
    denom = jnp.sum(eT, axis=0, keepdims=True)                             # (1, L_i)

    # ---- deferred softmax normalization: PV on un-normalized exp ----
    h2_un = jnp.dot(v, eT.astype(jnp.bfloat16),
                    preferred_element_type=jnp.float32)                    # (C, L_i)
    h2 = h2_un * pl.reciprocal(denom, approx=True)                         # (C, L_i)

    # ---- proj_out (1x1 conv) + residual ----
    proj = jnp.dot(wp, h2.astype(jnp.bfloat16),
                   preferred_element_type=jnp.float32) + bp                # (C, L)
    o_ref[0] = (x + proj).astype(o_ref.dtype)

    # TODO(synk): add a kv-block online-softmax (flash-style) inner loop over L so
    # the (L,L) score tile stays within v7x's 32 MiB scoped VMEM once L >> 1K.


def self_attention_1d(x_ncl, params, temb=None):
    """x_ncl: (B, C, L) -> (B, C, L).  `temb` is unused (matches the module)."""
    del temb
    B, C, L = x_ncl.shape
    assert C % NUM_GROUPS == 0, "GroupNorm(32) needs C to be a multiple of 32"

    x = x_ncl.astype(jnp.float32)
    scale = float(int(C) ** (-0.5))

    # ---- parameter re-layout (done once, outside the hot path) ----
    wqkv = jnp.concatenate(
        [params['q_w'][:, :, 0] * scale,            # fold C^-0.5 into q weights
         params['k_w'][:, :, 0],
         params['v_w'][:, :, 0]], axis=0).astype(jnp.bfloat16)          # (3C, C)
    wp = params['proj_w'][:, :, 0].astype(jnp.bfloat16)                 # (C, C)

    gids = jnp.arange(C) // (C // NUM_GROUPS)
    gp = (gids[:, None] == gids[None, :]).astype(jnp.float32)           # (C, C)

    bqkv = jnp.concatenate(
        [params['q_b'] * scale, params['k_b'], params['v_b']])          # (3C,)
    gbp = jnp.concatenate(
        [params['norm_g'], params['norm_b'], params['proj_b']])         # (3C,)
    vecs = jnp.stack([bqkv, gbp], axis=1).astype(jnp.float32)           # (3C, 2)

    def rep(a):
        zeros = (0,) * a.ndim
        return pl.BlockSpec(a.shape, lambda i, _z=zeros: _z)

    operands = (x, wqkv, wp, gp, vecs)
    in_specs = [pl.BlockSpec((1, C, L), lambda i: (i, 0, 0))] + [rep(a) for a in operands[1:]]

    flops_per_item = (6 * C * C * L          # fused qkv 1x1 conv
                      + 4 * C * L * L        # scores + PV matmuls
                      + 2 * C * C * L        # proj_out
                      + 4 * C * C            # group-stat matvecs
                      + 14 * C * L)          # GN / softmax / residual elementwise
    cost = pl.CostEstimate(
        flops=B * flops_per_item,
        transcendentals=B * (L * L + C + L),                       # exp, rsqrt, recip
        bytes_accessed=(2 * B * C * L * 4                          # x in + out
                        + 4 * C * C * 2                            # bf16 weights
                        + C * C * 4 + 3 * C * 2 * 4))              # gp + vecs

    return pl.pallas_call(
        self_attention_kernel,
        out_shape=jax.ShapeDtypeStruct((B, C, L), jnp.float32),
        grid_spec=pltpu.PrefetchScalarGridSpec(
            num_scalar_prefetch=0,
            grid=(B,),                      # B=4 -> 2 pipelined steps per v7x TC
            in_specs=in_specs,
            out_specs=pl.BlockSpec((1, C, L), lambda i: (i, 0, 0)),
        ),
        compiler_params=pltpu.CompilerParams(
            dimension_semantics=("parallel",),
        ),
        cost_estimate=cost,
    )(*operands)


def init_params(key, c, *, proj_init_scale=0.0):
    """Mirrors the PyTorch module's init (variance_scaling, fan_avg -> fan_out).

    The module uses init_scale=0.0 for proj_out; pass proj_init_scale=1.0 to get
    a non-degenerate proj so a numerical check exercises the attention path.
    """
    ks = jax.random.split(key, 4)

    def vs_uniform(k, shape, scale):
        out_ch, _, ksz = shape
        fan = out_ch * ksz                     # fan_out of a Conv1d weight (O, I, K)
        gain = 1e-10 if scale == 0.0 else scale
        bound = math.sqrt(3.0 * gain / max(1.0, fan))
        return jax.random.uniform(k, shape, jnp.float32, -bound, bound)

    return {
        'norm_g': jnp.ones((c,), jnp.float32),
        'norm_b': jnp.zeros((c,), jnp.float32),
        'q_w': vs_uniform(ks[0], (c, c, 1), 1.0), 'q_b': jnp.zeros((c,), jnp.float32),
        'k_w': vs_uniform(ks[1], (c, c, 1), 1.0), 'k_b': jnp.zeros((c,), jnp.float32),
        'v_w': vs_uniform(ks[2], (c, c, 1), 1.0), 'v_b': jnp.zeros((c,), jnp.float32),
        'proj_w': vs_uniform(ks[3], (c, c, 1), proj_init_scale),
        'proj_b': jnp.zeros((c,), jnp.float32),
    }


def reference_forward(x, p):
    """Pure-JAX (f32, HIGHEST precision) reference matching the PyTorch forward."""
    C = x.shape[1]
    prec = jax.lax.Precision.HIGHEST

    def gn(h):
        B, C_, L = h.shape
        hg = h.reshape(B, NUM_GROUPS, C_ // NUM_GROUPS, L)
        mean = hg.mean(axis=(2, 3), keepdims=True)
        var = hg.var(axis=(2, 3), keepdims=True)
        hn = ((hg - mean) / jnp.sqrt(var + EPS)).reshape(B, C_, L)
        return hn * p['norm_g'][None, :, None] + p['norm_b'][None, :, None]

    def c1x1(h_, w, b):
        return jnp.einsum('oc,bcl->bol', w[:, :, 0], h_, precision=prec) + b[None, :, None]

    h = gn(x)
    q = c1x1(h, p['q_w'], p['q_b'])
    k = c1x1(h, p['k_w'], p['k_b'])
    v = c1x1(h, p['v_w'], p['v_b'])
    attn = jnp.einsum('bci,bcj->bij', q, k, precision=prec) * (int(C) ** (-0.5))
    attn = jax.nn.softmax(attn, axis=-1)
    h2 = jnp.einsum('bcj,bij->bci', v, attn, precision=prec)
    h2 = c1x1(h2, p['proj_w'], p['proj_b'])
    return x + h2


if __name__ == "__main__":
    # GroupNorm(32) requires C to be a multiple of 32; L=128 keeps output stores
    # lane-dense; B=4 -> grid=(4,) gives each v7x TensorCore two pipelined steps.
    B, C, L = 4, 64, 128
    key = jax.random.PRNGKey(0)
    kx, kp = jax.random.split(key)
    x = jax.random.normal(kx, (B, C, L), jnp.float32)
    # module default proj init_scale=0.0 would zero out the attention branch;
    # use 1.0 here so the numeric check exercises the whole path.
    params = init_params(kp, C, proj_init_scale=1.0)

    out = jax.block_until_ready(self_attention_1d(x, params))

    ref = reference_forward(x, params)
    # tolerance accounts for bf16 MXU operands (f32 accumulation) + approx recip.
    np.testing.assert_allclose(np.asarray(out), np.asarray(ref), rtol=2e-2, atol=2e-2)
    print("KERNEL_OK")
</pallas_src>

<mosaic_0001>
module attributes {stable_mosaic.version = 11 : i64} {
  func.func @self_attention_kernel(%arg0: i32, %arg1: memref<1x64x128xf32, #tpu.memory_space<vmem>>, %arg2: memref<192x64xbf16, #tpu.memory_space<vmem>>, %arg3: memref<64x64xbf16, #tpu.memory_space<vmem>>, %arg4: memref<64x64xf32, #tpu.memory_space<vmem>>, %arg5: memref<192x2xf32, #tpu.memory_space<vmem>>, %arg6: memref<1x64x128xf32, #tpu.memory_space<vmem>>) attributes {dimension_semantics = [#tpu.dimension_semantics<parallel>], iteration_bounds = array<i64: 4>, scalar_prefetch = 0 : i64, scratch_operands = 0 : i64, tpu.core_type = #tpu.core_type<tc>, window_params = [{transform_indices = @transform_0, window_bounds = array<i64: 1, 64, 128>}, {pipeline_mode = #tpu.pipeline_mode<synchronous>, transform_indices = @transform_1, window_bounds = array<i64: 192, 64>}, {pipeline_mode = #tpu.pipeline_mode<synchronous>, transform_indices = @transform_2, window_bounds = array<i64: 64, 64>}, {pipeline_mode = #tpu.pipeline_mode<synchronous>, transform_indices = @transform_3, window_bounds = array<i64: 64, 64>}, {pipeline_mode = #tpu.pipeline_mode<synchronous>, transform_indices = @transform_4, window_bounds = array<i64: 192, 2>}, {transform_indices = @transform_5, window_bounds = array<i64: 1, 64, 128>}]} {
    %c0 = arith.constant 0 : index
    %c0_0 = arith.constant 0 : index
    %c0_1 = arith.constant 0 : index
    %0 = vector.load %arg1[%c0, %c0_0, %c0_1] : memref<1x64x128xf32, #tpu.memory_space<vmem>>, vector<1x64x128xf32>
    %1 = vector.shape_cast %0 : vector<1x64x128xf32> to vector<64x128xf32>
    %c0_2 = arith.constant 0 : index
    %c0_3 = arith.constant 0 : index
    %2 = vector.load %arg2[%c0_2, %c0_3] : memref<192x64xbf16, #tpu.memory_space<vmem>>, vector<192x64xbf16>
    %c0_4 = arith.constant 0 : index
    %c0_5 = arith.constant 0 : index
    %3 = vector.load %arg3[%c0_4, %c0_5] : memref<64x64xbf16, #tpu.memory_space<vmem>>, vector<64x64xbf16>
    %c0_6 = arith.constant 0 : index
    %c0_7 = arith.constant 0 : index
    %4 = vector.load %arg4[%c0_6, %c0_7] : memref<64x64xf32, #tpu.memory_space<vmem>>, vector<64x64xf32>
    %c0_8 = arith.constant 0 : index
    %c0_9 = arith.constant 0 : index
    %5 = vector.load %arg5[%c0_8, %c0_9] : memref<192x2xf32, #tpu.memory_space<vmem>>, vector<192x2xf32>
    %6 = vector.extract_strided_slice %5 {offsets = [0, 0], sizes = [192, 1], strides = [1, 1]} : vector<192x2xf32> to vector<192x1xf32>
    %7 = vector.extract_strided_slice %5 {offsets = [0, 1], sizes = [64, 1], strides = [1, 1]} : vector<192x2xf32> to vector<64x1xf32>
    %8 = vector.extract_strided_slice %5 {offsets = [64, 1], sizes = [64, 1], strides = [1, 1]} : vector<192x2xf32> to vector<64x1xf32>
    %9 = vector.extract_strided_slice %5 {offsets = [128, 1], sizes = [64, 1], strides = [1, 1]} : vector<192x2xf32> to vector<64x1xf32>
    %cst = arith.constant dense<0.000000e+00> : vector<64xf32>
    %10 = vector.multi_reduction <add>, %1, %cst [1] : vector<64x128xf32> to vector<64xf32>
    %11 = vector.shape_cast %10 : vector<64xf32> to vector<64x1xf32>
    %cst_10 = arith.constant dense<0.000000e+00> : vector<64x1xf32>
    %12 = tpu.matmul %4, %11, %cst_10 {dimension_numbers = #tpu.dot_dimension_numbers<[1], [0], [0], [1], [0, 0, 1, 1], [], []>} : vector<64x64xf32>, vector<64x1xf32>, vector<64x1xf32> -> vector<64x1xf32>
    %cst_11 = arith.constant 3.906250e-03 : f32
    %13 = vector.broadcast %cst_11 : f32 to vector<64x1xf32>
    %14 = arith.mulf %12, %13 : vector<64x1xf32>
    %15 = vector.broadcast %14 : vector<64x1xf32> to vector<64x128xf32>
    %16 = arith.subf %1, %15 : vector<64x128xf32>
    %17 = arith.mulf %16, %16 : vector<64x128xf32>
    %cst_12 = arith.constant dense<0.000000e+00> : vector<64xf32>
    %18 = vector.multi_reduction <add>, %17, %cst_12 [1] : vector<64x128xf32> to vector<64xf32>
    %19 = vector.shape_cast %18 : vector<64xf32> to vector<64x1xf32>
    %cst_13 = arith.constant dense<0.000000e+00> : vector<64x1xf32>
    %20 = tpu.matmul %4, %19, %cst_13 {dimension_numbers = #tpu.dot_dimension_numbers<[1], [0], [0], [1], [0, 0, 1, 1], [], []>} : vector<64x64xf32>, vector<64x1xf32>, vector<64x1xf32> -> vector<64x1xf32>
    %cst_14 = arith.constant 3.906250e-03 : f32
    %21 = vector.broadcast %cst_14 : f32 to vector<64x1xf32>
    %22 = arith.mulf %20, %21 : vector<64x1xf32>
    %cst_15 = arith.constant 9.99999997E-7 : f32
    %23 = vector.broadcast %cst_15 : f32 to vector<64x1xf32>
    %24 = arith.addf %22, %23 : vector<64x1xf32>
    %25 = math.rsqrt %24 : vector<64x1xf32>
    %26 = arith.mulf %25, %7 : vector<64x1xf32>
    %27 = vector.broadcast %26 : vector<64x1xf32> to vector<64x128xf32>
    %28 = arith.mulf %16, %27 : vector<64x128xf32>
    %29 = vector.broadcast %8 : vector<64x1xf32> to vector<64x128xf32>
    %30 = arith.addf %28, %29 : vector<64x128xf32>
    %31 = arith.truncf %30 : vector<64x128xf32> to vector<64x128xbf16>
    %cst_16 = arith.constant dense<0.000000e+00> : vector<192x128xf32>
    %32 = tpu.matmul %2, %31, %cst_16 {dimension_numbers = #tpu.dot_dimension_numbers<[1], [0], [0], [1], [0, 0, 1, 1], [], []>} : vector<192x64xbf16>, vector<64x128xbf16>, vector<192x128xf32> -> vector<192x128xf32>
    %33 = vector.broadcast %6 : vector<192x1xf32> to vector<192x128xf32>
    %34 = arith.addf %32, %33 : vector<192x128xf32>
    %35 = vector.extract_strided_slice %34 {offsets = [0, 0], sizes = [64, 128], strides = [1, 1]} : vector<192x128xf32> to vector<64x128xf32>
    %36 = arith.truncf %35 : vector<64x128xf32> to vector<64x128xbf16>
    %37 = vector.extract_strided_slice %34 {offsets = [64, 0], sizes = [64, 128], strides = [1, 1]} : vector<192x128xf32> to vector<64x128xf32>
    %38 = arith.truncf %37 : vector<64x128xf32> to vector<64x128xbf16>
    %39 = vector.extract_strided_slice %34 {offsets = [128, 0], sizes = [64, 128], strides = [1, 1]} : vector<192x128xf32> to vector<64x128xf32>
    %40 = arith.truncf %39 : vector<64x128xf32> to vector<64x128xbf16>
    %cst_17 = arith.constant dense<0.000000e+00> : vector<128x128xf32>
    %41 = tpu.matmul %38, %36, %cst_17 {dimension_numbers = #tpu.dot_dimension_numbers<[0], [0], [1], [1], [0, 1, 1, 1], [], []>} : vector<64x128xbf16>, vector<64x128xbf16>, vector<128x128xf32> -> vector<128x128xf32>
    %cst_18 = arith.constant dense<0xFF800000> : vector<128xf32>
    %42 = vector.multi_reduction <maximumf>, %41, %cst_18 [0] : vector<128x128xf32> to vector<128xf32>
    %43 = vector.shape_cast %42 : vector<128xf32> to vector<1x128xf32>
    %44 = vector.broadcast %43 : vector<1x128xf32> to vector<128x128xf32>
    %45 = arith.subf %41, %44 : vector<128x128xf32>
    %46 = math.exp %45 : vector<128x128xf32>
    %cst_19 = arith.constant dense<0.000000e+00> : vector<128xf32>
    %47 = vector.multi_reduction <add>, %46, %cst_19 [0] : vector<128x128xf32> to vector<128xf32>
    %48 = vector.shape_cast %47 : vector<128xf32> to vector<1x128xf32>
    %49 = arith.truncf %46 : vector<128x128xf32> to vector<128x128xbf16>
    %cst_20 = arith.constant dense<0.000000e+00> : vector<64x128xf32>
    %50 = tpu.matmul %40, %49, %cst_20 {dimension_numbers = #tpu.dot_dimension_numbers<[1], [0], [0], [1], [0, 0, 1, 1], [], []>} : vector<64x128xbf16>, vector<128x128xbf16>, vector<64x128xf32> -> vector<64x128xf32>
    %51 = tpu.reciprocal %48 {approx = true} : vector<1x128xf32> -> vector<1x128xf32>
    %52 = vector.broadcast %51 : vector<1x128xf32> to vector<64x128xf32>
    %53 = arith.mulf %50, %52 : vector<64x128xf32>
    %54 = arith.truncf %53 : vector<64x128xf32> to vector<64x128xbf16>
    %cst_21 = arith.constant dense<0.000000e+00> : vector<64x128xf32>
    %55 = tpu.matmul %3, %54, %cst_21 {dimension_numbers = #tpu.dot_dimension_numbers<[1], [0], [0], [1], [0, 0, 1, 1], [], []>} : vector<64x64xbf16>, vector<64x128xbf16>, vector<64x128xf32> -> vector<64x128xf32>
    %56 = vector.broadcast %9 : vector<64x1xf32> to vector<64x128xf32>
    %57 = arith.addf %55, %56 : vector<64x128xf32>
    %58 = arith.addf %1, %57 : vector<64x128xf32>
    %c0_22 = arith.constant 0 : index
    %c0_23 = arith.constant 0 : index
    %c0_24 = arith.constant 0 : index
    %59 = vector.load %arg6[%c0_22, %c0_23, %c0_24] : memref<1x64x128xf32, #tpu.memory_space<vmem>>, vector<1x64x128xf32>
    %60 = vector.shape_cast %59 : vector<1x64x128xf32> to vector<64x128xf32>
    %61 = vector.shape_cast %58 : vector<64x128xf32> to vector<1x64x128xf32>
    tpu.vector_store %arg6[%c0_22, %c0_23, %c0_24], %61 {strides = array<i32>} : memref<1x64x128xf32, #tpu.memory_space<vmem>>, vector<1x64x128xf32>,
    return
  }
  func.func @transform_0(%arg0: i32) -> (i32, i32, i32) {
    %c0_i32 = arith.constant 0 : i32
    %c0_i32_0 = arith.constant 0 : i32
    %c0_i32_1 = arith.constant 0 : i32
    return %arg0, %c0_i32, %c0_i32_0 : i32, i32, i32
  }
  func.func @transform_1(%arg0: i32) -> (i32, i32) {
    %c0_i32 = arith.constant 0 : i32
    %c0_i32_0 = arith.constant 0 : i32
    %c0_i32_1 = arith.constant 0 : i32
    return %c0_i32, %c0_i32_0 : i32, i32
  }
  func.func @transform_2(%arg0: i32) -> (i32, i32) {
    %c0_i32 = arith.constant 0 : i32
    %c0_i32_0 = arith.constant 0 : i32
    %c0_i32_1 = arith.constant 0 : i32
    return %c0_i32, %c0_i32_0 : i32, i32
  }
  func.func @transform_3(%arg0: i32) -> (i32, i32) {
    %c0_i32 = arith.constant 0 : i32
    %c0_i32_0 = arith.constant 0 : i32
    %c0_i32_1 = arith.constant 0 : i32
    return %c0_i32, %c0_i32_0 : i32, i32
  }
  func.func @transform_4(%arg0: i32) -> (i32, i32) {
    %c0_i32 = arith.constant 0 : i32
    %c0_i32_0 = arith.constant 0 : i32
    %c0_i32_1 = arith.constant 0 : i32
    return %c0_i32, %c0_i32_0 : i32, i32
  }
  func.func @transform_5(%arg0: i32) -> (i32, i32, i32) {
    %c0_i32 = arith.constant 0 : i32
    %c0_i32_0 = arith.constant 0 : i32
    %c0_i32_1 = arith.constant 0 : i32
    return %arg0, %c0_i32, %c0_i32_0 : i32, i32, i32
  }
}

</mosaic_0001>

<bundles_post_ra>
// kernel: tpu_custom_call.1
= control target key start
LH: loop header
LB: loop body
LE: loop exit
PB: predicated region body
PF: predicated region fallthrough
CT: control target
= control target key end

     0   :  { %10 = vsyncpa [#allocation3], 0  ;;  %s2700_s0 = inlined_call_operand.vmem [shape: f32[4,64,128], index: 0, kind: input, shape index: {}]   ;;  %s2701_s1 = inlined_call_operand.vmem [shape: bf16[192,64], index: 1, kind: input, shape index: {}]   ;;  %s2702_s2 = inlined_call_operand.vmem [shape: bf16[64,64], index: 2, kind: input, shape index: {}]   ;;  %s2703_s3 = inlined_call_operand.vmem [shape: f32[64,64], index: 3, kind: input, shape index: {}]   ;;  %s2704_s4 = inlined_call_operand.vmem [shape: f32[192,2], index: 4, kind: input, shape index: {}]   ;;  %s2705_s5 = inlined_call_operand.hbm [shape: f32[4,64,128], index: 5, kind: output, shape index: {}]  }
   0x1   :  { %12 = vsyncpa [#allocation3 + $0x1], 0  ;;  %s2206_s18 = smov 0   ;;  %s2208_s19 = smov 0  }
   0x2   :  { %s2210_s20 = smov 0   ;;  %s2212_s21 = smov 0  }
   0x3 LB: > { %s2227_s22 = sadd.s32 4294967295, %s2168_s21   ;;  %s1666_s23 = sadd.s32 4294967294, %s2168_s21   ;;  %s2168_s21 = sphi %s2212_s21, %s2711_s21   ;;  %s2164_s20 = sphi %s2210_s20, %s2710_s20   ;;  %s2160_s19 = sphi %s2208_s19, %s2709_s19   ;;  %s2156_s18 = sphi %s2206_s18, %s2708_s18  }
   0x4   : > { %s2231_s24 = sadd.s32 1, %s2168_s21   ;;  %s135_s25 = sadd.s32 1, %s2164_s20 }
   0x5   : > { %s132_s26 = ssub.s32 %s2168_s21, %s2231_s24  ;;  %p145_p0 = scmp.ne.s32.totalorder %s2164_s20, %s2160_s19 }
   0x6   : > { %p133_p1 = scmp.eq.s32.totalorder %s132_s26, 0  ;;  %p146_p2 = scmp.eq.s32.totalorder %s2227_s22, 3 }
   0x7   : > { %p151_p3 = scmp.ne.s32.totalorder %s2160_s19, %s2156_s18  ;;  %p152_p4 = scmp.eq.s32.totalorder %s1666_s23, 3 }
   0x8   : > { %s2242_s27 = scalar_select %p133_p1, %s2164_s20, %s135_s25  }
   0x9   : > { %p2244_p5 = por %p146_p2, %p145_p0  ;;  %p2248_p6 = por %p152_p4, %p151_p3 }
   0xa   : > { %p1669_p7 = scmp.ge.s32.totalorder %s2168_s21, 1  ;;  %p190_p8 = scmp.lt.s32.totalorder %s2168_s21, 5 }
   0xc   : > { %p191_p9 = pnand %p1669_p7, %p190_p8 }
   0xd   : > { %p218_p10 = scmp.lt.s32.totalorder (!%p191_p9), %s2227_s22, 3  ;;  %s2171_s15 = smov (!%p191_p9), 127  }
   0xe   : > { %194 = sbr.rel (%p191_p9) target bundleno = 2130 (0x852), region = 40  ;;  %s215_s17 = sand.u32 (!%p191_p9), 1, %s2160_s19  }
   0xf   : > { %s1670_s23 = sshll.u32 (!%p191_p9), %s215_s17, 6  ;;  %s1735_s26 = sshll.u32 (!%p191_p9), %s2227_s22, 10 }
  0x10   : > { %s217_s25 = scalar_lea.vmem (!%p191_p9), [#allocation2], %s1670_s23  ;;  %s2652_s8 = scalar_lea.hbm (!%p191_p9), %s2705_s5, %s1735_s26 }
  0x11   : > { %s2173_s11 = smov (!%p191_p9), [#allocation2]  }
  0x12   : > { %s2112_s12 = sshll.u32 (!%p191_p9), %s2173_s11, 4  ;;  %s2113_s12 = int_to_ptr.vmem [resolvable:$false] %s2112_s12 }
  0x13   : > { %s219_s30 = scalar_select %p218_p10, %s2227_s22, 3  ;;  %v264_v8 = vld [vmem:[%s2703_s3] sm:$0xff]  ;;  %vm312_vm0 = vcmask 523264   ;;  %v2301_v17 = vld [vmem:[%s2703_s3 + $0x8] sm:$0xff]  ;;  %v2306_v18 = vld [vmem:[%s2703_s3 + $0x10] sm:$0xff]  ;;  %v2170_v24 = vmov 0  }
  0x14   : > { %1832 = vmatprep.mubr.msk.f32.mxu0 %vm312_vm0, %v264_v8  ;;  %1860 = vmatprep.mubr.msk.f32.mxu1 %vm312_vm0, %v264_v8  ;;  %v2315_v19 = vld [vmem:[%s2703_s3 + $0x18] sm:$0xff]  ;;  %v2320_v20 = vld [vmem:[%s2703_s3 + $0x20] sm:$0xff]  ;;  %v2329_v21 = vld [vmem:[%s2703_s3 + $0x28] sm:$0xff]  ;;  %s2660_s22 = scalar_lea.sflag [#allocation3], %s215_s17  ;;  %s2114_s13 = scalar_lea.vmem %s2113_s12, 2048 }
  0x15   : > { %s1734_s6 = sshll.u32 %s219_s30, 6  ;;  %v2334_v22 = vld [vmem:[%s2703_s3 + $0x30] sm:$0xff]  ;;  %v2343_v23 = vld [vmem:[%s2703_s3 + $0x38] sm:$0xff]  ;;  %2021 = vset.pattern.permute.xlu1 %v2170_v24  ;;  %2020 = vset.pattern.permute.xlu0 %v2170_v24  ;;  %v2433_v8 = vld [vmem:[%s2704_s4] sm:$0xff]  ;;  %s1604_s30 = sshll.u32 %s217_s25, 4  ;;  %s2654_s30 = int_to_ptr.vmem [resolvable:$true] %s1604_s30 }
  0x16   : > { %s2259_s9 = scalar_lea.vmem %s2700_s0, %s1734_s6  ;;  %s2108_s10 = scalar_lea.vmem %s2654_s30, 1024 }
  0x17   : > { %v2262_v0 = vld [vmem:[%s2259_s9 + $0x38] sm:$0xff]  ;;  %v2265_v1 = vld [vmem:[%s2259_s9 + $0x28] sm:$0xff]  ;;  %v2270_v2 = vld [vmem:[%s2259_s9 + $0x30] sm:$0xff]  ;;  %p2109_p11 = scmp.ne.s32.totalorder %s2654_s30, %s2108_s10  ;;  %p2115_p0 = scmp.lt.s32.totalorder %s2654_s30, %s2113_s12 }
  0x18   : > { %310 = vadd.xlane.f32.xlu0 %v2262_v0  ;;  %306 = vadd.xlane.f32.xlu1 %v2265_v1  ;;  %v2273_v3 = vld [vmem:[%s2259_s9 + $0x20] sm:$0xff]  ;;  %v2276_v4 = vld [vmem:[%s2259_s9 + $0x18] sm:$0xff]  ;;  %v2279_v5 = vld [vmem:[%s2259_s9 + $0x10] sm:$0xff]  ;;  %p2116_p1 = scmp.lt.s32.totalorder %s2114_s13, %s2108_s10 }
  0x19   : > { %v2286_v6 = vld [vmem:[%s2259_s9 + $0x8] sm:$0xff]  ;;  %v2289_v7 = vld [vmem:[%s2259_s9] sm:$0xff]  ;;  %p2110_p12 = pnand %p2109_p11, %p2244_p5 }
  0x1a   : > { %p2117_p2 = por %p2116_p1, %p2115_p0 }
  0x1b   : > { %p2111_p13 = pneg %p2110_p12 }
  0x1c   : > { %308 = vadd.xlane.f32.xlu0 %v2270_v2  ;;  %304 = vadd.xlane.f32.xlu1 %v2273_v3 }
  0x1d   : > { %p2118_p3 = pnand %p2117_p2, %p2111_p13 }
  0x20   : > { %302 = vadd.xlane.f32.xlu0 %v2276_v4  ;;  %300 = vadd.xlane.f32.xlu1 %v2279_v5 }
  0x24   : > { %298 = vadd.xlane.f32.xlu0 %v2286_v6  ;;  %296 = vadd.xlane.f32.xlu1 %v2289_v7 }
  0xa1   : > { %v311_v9 = vpop.xlane.xlu0 %310  ;;  %v307_v10 = vpop.xlane.xlu1 %306 }
  0xa2   : > { %1816 = vmatprep.subr.mxu0 %v311_v9 }
  0xa3   : > { %1817 = vmatpush3.msra.mxu0 %v311_v9 }
  0xa5   : > { %v309_v11 = vpop.xlane.xlu0 %308  ;;  %v305_v12 = vpop.xlane.xlu1 %304 }
  0xa6   : > { %1818 = vmatprep.subr.mxu0 %v309_v11 }
  0xa7   : > { %1819 = vmatpush3.msra.mxu0 %v309_v11 }
  0xa8   : > { %1820 = vmatprep.subr.mxu0 %v307_v10 }
  0xa9   : > { %1821 = vmatpush3.msra.mxu0 %v307_v10  ;;  %v303_v13 = vpop.xlane.xlu0 %302  ;;  %v301_v14 = vpop.xlane.xlu1 %300 }
  0xaa   : > { %1822 = vmatprep.subr.mxu0 %v305_v12 }
  0xab   : > { %1823 = vmatpush3.msra.mxu0 %v305_v12 }
  0xac   : > { %1824 = vmatprep.subr.mxu0 %v303_v13 }
  0xad   : > { %1825 = vmatpush3.msra.mxu0 %v303_v13  ;;  %v299_v15 = vpop.xlane.xlu0 %298  ;;  %v297_v16 = vpop.xlane.xlu1 %296 }
  0xae   : > { %1826 = vmatprep.subr.mxu0 %v301_v14 }
  0xaf   : > { %1827 = vmatpush3.msra.mxu0 %v301_v14 }
  0xb0   : > { %1828 = vmatprep.subr.mxu0 %v299_v15 }
  0xb1   : > { %1829 = vmatpush3.msra.mxu0 %v299_v15 }
  0xb2   : > { %1830 = vmatprep.subr.mxu0 %v297_v16 }
  0xb3   : > { %1831 = vmatpush3.msra.mxu0 %v297_v16 }
  0xb4   : > { %1833 = vmatmul.mubr.msk.f32.vlgmr.msra.gmra.mxu0 %vm312_vm0, %v2301_v17 }
  0xb5   : > { %1835 = vmatprep.mubr.msk.f32.mxu0 %vm312_vm0, %v2306_v18 }
  0xb8   : > { %1836 = vmatmul.mubr.msk.f32.gmra.mxu0 %vm312_vm0, %v2315_v19 }
  0xb9   : > { %1838 = vmatprep.mubr.msk.f32.mxu0 %vm312_vm0, %v2320_v20 }
  0xbc   : > { %1839 = vmatmul.mubr.msk.f32.gmra.mxu0 %vm312_vm0, %v2329_v21 }
  0xbd   : > { %1841 = vmatprep.mubr.msk.f32.mxu0 %vm312_vm0, %v2334_v22 }
  0xc0   : > { %1842 = vmatmul.mubr.msk.f32.gmra.mxu0 %vm312_vm0, %v2343_v23 }
 0x174   : > { %v1834_v25 = vpop.f32.mrf.mxu0 }
 0x175   : > { %v443_v39 = vmul.f32 0.00390625, %v1834_v25  ;;  %v2172_v25 = vmov 1  }
 0x176   : > { %v403_v26 = vpop.f32.mrf.mxu0 }
 0x177   : > { %v442_v40 = vmul.f32 0.00390625, %v403_v26 }
 0x178   : > { %v1837_v27 = vpop.f32.mrf.mxu0 }
 0x179   : > { %v445_v35 = vmul.f32 0.00390625, %v1837_v27 }
 0x17a   : > { %v413_v28 = vpop.f32.mrf.mxu0 }
 0x17b   : > { %v444_v38 = vmul.f32 0.00390625, %v413_v28 }
 0x17c   : > { %v1840_v29 = vpop.f32.mrf.mxu0 }
 0x17d   : > { %v447_v30 = vmul.f32 0.00390625, %v1840_v29 }
 0x17e   : > { %v423_v31 = vpop.f32.mrf.mxu0 }
 0x17f   : > { %477 = vperm.xlu1 %2021, %v447_v30   ;;  %v446_v33 = vmul.f32 0.00390625, %v423_v31 }
 0x180   : > { %v1843_v32 = vpop.f32.mrf.mxu0 }
 0x181   : > { %v449_v34 = vmul.f32 0.00390625, %v1843_v32 }
 0x182   : > { %v433_v36 = vpop.f32.mrf.mxu0 }
 0x183   : > { %472 = vperm.xlu1 %2021, %v446_v33   ;;  %487 = vperm.xlu0 %2020, %v449_v34   ;;  %v448_v37 = vmul.f32 0.00390625, %v433_v36 }
 0x187   : > { %467 = vperm.xlu1 %2021, %v445_v35   ;;  %2023 = vset.pattern.permute.xlu0 %v2172_v25 }
 0x18b   : > { %482 = vperm.xlu1 %2021, %v448_v37  }
 0x18f   : > { %462 = vperm.xlu1 %2021, %v444_v38  }
 0x193   : > { %457 = vperm.xlu1 %2021, %v443_v39  }
 0x197   : > { %452 = vperm.xlu1 %2021, %v442_v40  }
 0x19b   : > { %2022 = vset.pattern.permute.xlu1 %v2172_v25 }
 0x1fa   : > { %v478_v41 = vpop.permute.xlu1 %477 }
 0x1fb   : > { %v2363_v51 = vsub.f32 %v2265_v1, %v478_v41  ;;  %v2392_v1 = vld [vmem:[%s2704_s4 + $0x30] sm:$0xff] }
 0x1fd   : > { %v503_v56 = vmul.f32 %v2363_v51, %v2363_v51 }
 0x1fe   : > { %v473_v42 = vpop.permute.xlu1 %472  ;;  %v488_v43 = vpop.permute.xlu0 %487 }
 0x1ff   : > { %v2350_v44 = vsub.f32 %v2262_v0, %v488_v43  ;;  %v2353_v45 = vsub.f32 %v2273_v3, %v473_v42  ;;  %v2404_v3 = vld [vmem:[%s2704_s4 + $0x28] sm:$0xff] }
 0x201   : > { %v505_v46 = vmul.f32 %v2350_v44, %v2350_v44  ;;  %v502_v48 = vmul.f32 %v2353_v45, %v2353_v45 }
 0x202   : > { %v468_v47 = vpop.permute.xlu1 %467 }
 0x203   : > { %520 = vadd.xlane.f32.xlu1 %v505_v46  ;;  %v2371_v55 = vsub.f32 %v2276_v4, %v468_v47  ;;  %v2409_v4 = vld [vmem:[%s2704_s4 + $0x20] sm:$0xff] }
 0x205   : > { %v501_v60 = vmul.f32 %v2371_v55, %v2371_v55 }
 0x206   : > { %v483_v49 = vpop.permute.xlu1 %482 }
 0x207   : > { %v2360_v50 = vsub.f32 %v2270_v2, %v483_v49  ;;  %514 = vadd.xlane.f32.xlu1 %v502_v48  ;;  %v2397_v2 = vld [vmem:[%s2704_s4 + $0x38] sm:$0xff] }
 0x209   : > { %v504_v52 = vmul.f32 %v2360_v50, %v2360_v50 }
 0x20a   : > { %v463_v53 = vpop.permute.xlu1 %462 }
 0x20b   : > { %v2368_v54 = vsub.f32 %v2279_v5, %v463_v53  ;;  %518 = vadd.xlane.f32.xlu0 %v504_v52  ;;  %v2416_v5 = vld [vmem:[%s2704_s4 + $0x18] sm:$0xff] }
 0x20d   : > { %v500_v57 = vmul.f32 %v2368_v54, %v2368_v54 }
 0x20e   : > { %v458_v58 = vpop.permute.xlu1 %457 }
 0x20f   : > { %516 = vadd.xlane.f32.xlu0 %v503_v56  ;;  %510 = vadd.xlane.f32.xlu1 %v500_v57  ;;  %v2378_v59 = vsub.f32 %v2286_v6, %v458_v58  ;;  %v2421_v6 = vld [vmem:[%s2704_s4 + $0x10] sm:$0xff] }
 0x211   : > { %v499_v63 = vmul.f32 %v2378_v59, %v2378_v59 }
 0x212   : > { %v453_v61 = vpop.permute.xlu1 %452 }
 0x213   : > { %v2383_v62 = vsub.f32 %v2289_v7, %v453_v61  ;;  %512 = vadd.xlane.f32.xlu0 %v501_v60  ;;  %v2428_v7 = vld [vmem:[%s2704_s4 + $0x8] sm:$0xff] }
 0x215   : > { %v498_v0 = vmul.f32 %v2383_v62, %v2383_v62 }
 0x217   : > { %508 = vadd.xlane.f32.xlu0 %v499_v63  ;;  %506 = vadd.xlane.f32.xlu1 %v498_v0 }
 0x228   : > { %673 = vrot.lane.b32.xlu1 %v2397_v2, %s2171_s15 }
 0x22c   : > { %667 = vrot.lane.b32.xlu1 %v2409_v4, %s2171_s15 }
 0x22d   : > { %671 = vrot.lane.b32.xlu0 %v2392_v1, %s2171_s15 }
 0x230   : > { %663 = vrot.lane.b32.xlu1 %v2421_v6, %s2171_s15 }
 0x231   : > { %669 = vrot.lane.b32.xlu0 %v2404_v3, %s2171_s15 }
 0x234   : > { %659 = vrot.lane.b32.xlu1 %v2433_v8, %s2171_s15 }
 0x235   : > { %665 = vrot.lane.b32.xlu0 %v2416_v5, %s2171_s15 }
 0x239   : > { %661 = vrot.lane.b32.xlu0 %v2428_v7, %s2171_s15 }
 0x28c   : > { %v521_v9 = vpop.xlane.xlu1 %520 }
 0x28d   : > { %1844 = vmatprep.subr.mxu1 %v521_v9 }
 0x28e   : > { %1845 = vmatpush3.msra.mxu1 %v521_v9 }
 0x290   : > { %v515_v12 = vpop.xlane.xlu1 %514 }
 0x294   : > { %v519_v10 = vpop.xlane.xlu0 %518 }
 0x295   : > { %1846 = vmatprep.subr.mxu1 %v519_v10 }
 0x296   : > { %1847 = vmatpush3.msra.mxu1 %v519_v10 }
 0x298   : > { %v517_v11 = vpop.xlane.xlu0 %516  ;;  %v511_v14 = vpop.xlane.xlu1 %510 }
 0x299   : > { %1848 = vmatprep.subr.mxu1 %v517_v11 }
 0x29a   : > { %1849 = vmatpush3.msra.mxu1 %v517_v11 }
 0x29b   : > { %1850 = vmatprep.subr.mxu1 %v515_v12 }
 0x29c   : > { %v513_v13 = vpop.xlane.xlu0 %512  ;;  %1851 = vmatpush3.msra.mxu1 %v515_v12 }
 0x29d   : > { %1852 = vmatprep.subr.mxu1 %v513_v13 }
 0x29e   : > { %1853 = vmatpush3.msra.mxu1 %v513_v13 }
 0x29f   : > { %1854 = vmatprep.subr.mxu1 %v511_v14 }
 0x2a0   : > { %v509_v15 = vpop.xlane.xlu0 %508  ;;  %1855 = vmatpush3.msra.mxu1 %v511_v14  ;;  %v507_v16 = vpop.xlane.xlu1 %506  ;;  %v284_v14 = vld [vmem:[%s2704_s4 + $0x60] sm:$0xff] }
 0x2a1   : > { %1856 = vmatprep.subr.mxu1 %v509_v15 }
 0x2a2   : > { %1857 = vmatpush3.msra.mxu1 %v509_v15 }
 0x2a3   : > { %1858 = vmatprep.subr.mxu1 %v507_v16 }
 0x2a4   : > { %1859 = vmatpush3.msra.mxu1 %v507_v16  ;;  %v674_v34 = vpop.permute.xlu1 %673  ;;  %v672_v46 = vpop.permute.xlu0 %671 }
 0x2a5   : > { %1861 = vmatmul.mubr.msk.f32.vlgmr.msra.gmra.mxu1 %vm312_vm0, %v2301_v17  ;;  %v2455_v17 = vld [vmem:[%s2704_s4 + $0x70] sm:$0xff] }
 0x2a6   : > { %1863 = vmatprep.mubr.msk.f32.mxu1 %vm312_vm0, %v2306_v18  ;;  %771 = vperm.xlu1 %2022, %v2455_v17   ;;  %v2462_v18 = vld [vmem:[%s2704_s4 + $0x68] sm:$0xff] }
 0x2a8   : > { %v668_v42 = vpop.permute.xlu1 %667  ;;  %v670_v56 = vpop.permute.xlu0 %669 }
 0x2a9   : > { %1864 = vmatmul.mubr.msk.f32.gmra.mxu1 %vm312_vm0, %v2315_v19  ;;  %v2468_v19 = vld [vmem:[%s2704_s4 + $0x78] sm:$0xff] }
 0x2aa   : > { %1866 = vmatprep.mubr.msk.f32.mxu1 %vm312_vm0, %v2320_v20  ;;  %766 = vperm.xlu1 %2022, %v2462_v18  }
 0x2ab   : > { %776 = vperm.xlu0 %2023, %v2468_v19  }
 0x2ac   : > { %v664_v48 = vpop.permute.xlu1 %663  ;;  %v666_v12 = vpop.permute.xlu0 %665 }
 0x2ad   : > { %1867 = vmatmul.mubr.msk.f32.gmra.mxu1 %vm312_vm0, %v2329_v21 }
 0x2ae   : > { %1869 = vmatprep.mubr.msk.f32.mxu1 %vm312_vm0, %v2334_v22  ;;  %2025 = vset.pattern.permute.xlu1 %v2170_v24 }
 0x2af   : > { %2024 = vset.pattern.permute.xlu0 %v2170_v24 }
 0x2b1   : > { %1870 = vmatmul.mubr.msk.f32.gmra.mxu1 %vm312_vm0, %v2343_v23 }
 0x365   : > { %v1862_v20 = vpop.f32.mrf.mxu1 }
 0x366   : > { %v628_v60 = vmul.f32 0.00390625, %v1862_v20  ;;  %v283_v20 = vld [vmem:[%s2704_s4 + $0x58] sm:$0xff] }
 0x367   : > { %v588_v21 = vpop.f32.mrf.mxu1 }
 0x368   : > { %v627_v49 = vmul.f32 0.00390625, %v588_v21  ;;  %v636_v11 = vadd.f32 1e-06, %v628_v60  ;;  %v282_v21 = vld [vmem:[%s2704_s4 + $0x50] sm:$0xff] }
 0x369   : > { %v1865_v22 = vpop.f32.mrf.mxu1 }
 0x36a   : > { %v630_v31 = vmul.f32 0.00390625, %v1865_v22  ;;  %v635_v61 = vadd.f32 1e-06, %v627_v49  ;;  %v280_v22 = vld [vmem:[%s2704_s4 + $0x40] sm:$0xff] }
 0x36b   : > { %v598_v23 = vpop.f32.mrf.mxu1 }
 0x36c   : > { %v629_v26 = vmul.f32 0.00390625, %v598_v23  ;;  %v638_v39 = vadd.f32 1e-06, %v630_v31  ;;  %v281_v31 = vld [vmem:[%s2704_s4 + $0x48] sm:$0xff] }
 0x36d   : > { %v1868_v27 = vpop.f32.mrf.mxu1 }
 0x36e   : > { %v637_v28 = vadd.f32 1e-06, %v629_v26  ;;  %v632_v29 = vmul.f32 0.00390625, %v1868_v27  ;;  %v660_v26 = vpop.permute.xlu1 %659 }
 0x36f   : > { %v608_v30 = vpop.f32.mrf.mxu1 }
 0x370   : > { %2050 = vrsqrt.f32 %v637_v28  ;;  %v640_v32 = vadd.f32 1e-06, %v632_v29  ;;  %v631_v33 = vmul.f32 0.00390625, %v608_v30  ;;  %v662_v29 = vpop.permute.xlu0 %661 }
 0x371   : > { %v1871_v35 = vpop.f32.mrf.mxu1 }
 0x372   : > { %2052 = vrsqrt.f32 %v640_v32  ;;  %v639_v36 = vadd.f32 1e-06, %v631_v33  ;;  %v634_v37 = vmul.f32 0.00390625, %v1871_v35  ;;  %v2034_v32 = vld [vmem:[%s2701_s1] sm:$0xff]  }
 0x373   : > { %v618_v38 = vpop.f32.mrf.mxu1  ;;  %1880 = vmatprep.mubr.msk.bf16.mxu0 %vm312_vm0, %v2034_v32 }
 0x374   : > { %2054 = vrsqrt.f32 %v639_v36  ;;  %v642_v40 = vadd.f32 1e-06, %v634_v37  ;;  %v633_v41 = vmul.f32 0.00390625, %v618_v38 }
 0x376   : > { %2056 = vrsqrt.f32 %v642_v40  ;;  %v641_v43 = vadd.f32 1e-06, %v633_v41 }
 0x377   : > { %2058 = vrsqrt.f32 %v638_v39 }
 0x378   : > { %2060 = vrsqrt.f32 %v641_v43 }
 0x379   : > { %2062 = vrsqrt.f32 %v635_v61 }
 0x37a   : > { %2064 = vrsqrt.f32 %v636_v11  ;;  %v2035_v11 = vld [vmem:[%s2701_s1 + $0x8] sm:$0xff]  }
 0x37d   : > { %v2051_v47 = vpop.eup %2050 }
 0x37e   : > { %v685_v52 = vmul.f32 %v2051_v47, %v664_v48 }
 0x37f   : > { %v2053_v53 = vpop.eup %2052 }
 0x380   : > { %v688_v57 = vmul.f32 %v2053_v53, %v670_v56  ;;  %703 = vperm.xlu0 %2024, %v685_v52  }
 0x381   : > { %v2055_v58 = vpop.eup %2054 }
 0x382   : > { %718 = vperm.xlu1 %2025, %v688_v57   ;;  %v687_v0 = vmul.f32 %v2055_v58, %v668_v42 }
 0x383   : > { %v2057_v63 = vpop.eup %2056 }
 0x384   : > { %v690_v9 = vmul.f32 %v2057_v63, %v674_v34  ;;  %v2059_v10 = vpop.eup %2058 }
 0x385   : > { %v686_v13 = vmul.f32 %v2059_v10, %v666_v12  ;;  %v2061_v15 = vpop.eup %2060  ;;  %v2036_v12 = vld [vmem:[%s2701_s1 + $0x10] sm:$0xff]  }
 0x386   : > { %713 = vperm.xlu1 %2025, %v687_v0   ;;  %728 = vperm.xlu0 %2024, %v690_v9   ;;  %v689_v16 = vmul.f32 %v2061_v15, %v672_v46  ;;  %v2063_v23 = vpop.eup %2062  ;;  %v2041_v15 = vld [vmem:[%s2701_s1 + $0x38] sm:$0xff]  }
 0x387   : > { %v683_v27 = vmul.f32 %v2063_v23, %v660_v26  ;;  %v2065_v28 = vpop.eup %2064 }
 0x388   : > { %v684_v30 = vmul.f32 %v2065_v28, %v662_v29 }
 0x38a   : > { %708 = vperm.xlu1 %2025, %v686_v13   ;;  %2026 = vset.pattern.permute.xlu0 %v2172_v25  ;;  %v2039_v13 = vld [vmem:[%s2701_s1 + $0x28] sm:$0xff]  }
 0x38b   : > { %761 = vperm.xlu0 %2026, %v284_v14  }
 0x38e   : > { %723 = vperm.xlu1 %2025, %v689_v16   ;;  %v2042_v16 = vld [vmem:[%s2701_s1 + $0x40] sm:$0xff]  }
 0x38f   : > { %756 = vperm.xlu0 %2026, %v283_v20  }
 0x392   : > { %2027 = vset.pattern.permute.xlu1 %v2172_v25 }
 0x393   : > { %751 = vperm.xlu1 %2027, %v282_v21   ;;  %741 = vperm.xlu0 %2026, %v280_v22  }
 0x397   : > { %2028 = vset.pattern.permute.xlu1 %v2170_v24  ;;  %2030 = vset.pattern.permute.xlu0 %v2170_v24 }
 0x398   : > { %693 = vperm.xlu1 %2028, %v683_v27   ;;  %824 = vperm.xlu0 %2030, %v280_v22   ;;  %v2045_v22 = vld [vmem:[%s2701_s1 + $0x58] sm:$0xff]  }
 0x39c   : > { %698 = vperm.xlu1 %2028, %v684_v30   ;;  %836 = vperm.xlu0 %2030, %v283_v20   ;;  %v2043_v20 = vld [vmem:[%s2701_s1 + $0x48] sm:$0xff]  }
 0x3a0   : > { %2029 = vset.pattern.permute.xlu1 %v2172_v25  ;;  %844 = vperm.xlu0 %2030, %v2462_v18   ;;  %v777_v18 = vpop.permute.xlu0 %776 }
 0x3a1   : > { %746 = vperm.xlu1 %2029, %v281_v31  }
 0x3a4   : > { %852 = vperm.xlu0 %2030, %v2468_v19  }
 0x3a5   : > { %2031 = vset.pattern.permute.xlu1 %v2170_v24  ;;  %v288_v24 = vld [vmem:[%s2704_s4 + $0x80] sm:$0xff] }
 0x3a6   : > { %828 = vperm.xlu1 %2031, %v281_v31  }
 0x3a8   : > { %820 = vperm.xlu0 %2030, %v2397_v2   ;;  %v289_v2 = vld [vmem:[%s2704_s4 + $0x88] sm:$0xff] }
 0x3aa   : > { %832 = vperm.xlu1 %2031, %v282_v21   ;;  %v2044_v21 = vld [vmem:[%s2701_s1 + $0x50] sm:$0xff]  }
 0x3ac   : > { %812 = vperm.xlu0 %2030, %v2404_v3   ;;  %v2521_v3 = vld [vmem:[%s2704_s4 + $0x98] sm:$0xff] }
 0x3ae   : > { %840 = vperm.xlu1 %2031, %v284_v14   ;;  %v2040_v14 = vld [vmem:[%s2701_s1 + $0x30] sm:$0xff]  }
 0x3b0   : > { %804 = vperm.xlu0 %2030, %v2416_v5   ;;  %v293_v5 = vld [vmem:[%s2704_s4 + $0xa8] sm:$0xff] }
 0x3b2   : > { %848 = vperm.xlu1 %2031, %v2455_v17  }
 0x3b4   : > { %796 = vperm.xlu0 %2030, %v2428_v7   ;;  %v295_v7 = vld [vmem:[%s2704_s4 + $0xb8] sm:$0xff] }
 0x3b6   : > { %816 = vperm.xlu1 %2031, %v2392_v1   ;;  %v290_v1 = vld [vmem:[%s2704_s4 + $0x90] sm:$0xff] }
 0x3b8   : > { %857 = vperm.xlu0 %2030, %v288_v24  }
 0x3ba   : > { %808 = vperm.xlu1 %2031, %v2409_v4   ;;  %v292_v4 = vld [vmem:[%s2704_s4 + $0xa0] sm:$0xff] }
 0x3bc   : > { %862 = vperm.xlu0 %2030, %v289_v2  }
 0x3be   : > { %800 = vperm.xlu1 %2031, %v2421_v6   ;;  %v294_v6 = vld [vmem:[%s2704_s4 + $0xb0] sm:$0xff] }
 0x3c0   : > { %867 = vperm.xlu0 %2030, %v290_v1  }
 0x3c2   : > { %792 = vperm.xlu1 %2031, %v2433_v8   ;;  %v772_v8 = vpop.permute.xlu1 %771 }
 0x3c4   : > { %872 = vperm.xlu0 %2030, %v2521_v3  }
 0x3c6   : > { %v767_v17 = vpop.permute.xlu1 %766 }
 0x3c8   : > { %877 = vperm.xlu0 %2030, %v292_v4  }
 0x3cc   : > { %882 = vperm.xlu0 %2030, %v293_v5  }
 0x3d0   : > { %887 = vperm.xlu0 %2030, %v294_v6  }
 0x3d4   : > { %892 = vperm.xlu0 %2030, %v295_v7  }
 0x3d8   : > { %2032 = vset.pattern.permute.xlu0 %v2172_v25 }
 0x3d9   : > { %1446 = vperm.xlu0 %2032, %v288_v24  }
 0x3dd   : > { %1450 = vperm.xlu0 %2032, %v289_v2  }
 0x3e1   : > { %1454 = vperm.xlu0 %2032, %v290_v1  }
 0x3e5   : > { %1462 = vperm.xlu0 %2032, %v292_v4  }
 0x3e9   : > { %1466 = vperm.xlu0 %2032, %v293_v5  }
 0x3ed   : > { %1470 = vperm.xlu0 %2032, %v294_v6  }
 0x3f1   : > { %1474 = vperm.xlu0 %2032, %v295_v7  }
 0x3fb   : > { %v704_v33 = vpop.permute.xlu0 %703 }
 0x3fc   : > { %v733_v48 = vmul.f32 %v704_v33, %v2368_v54 }
 0x3fd   : > { %v719_v19 = vpop.permute.xlu1 %718 }
 0x3fe   : > { %v736_v40 = vmul.f32 %v719_v19, %v2363_v51 }
 0x400   : > { %v784_v49 = vadd.f32 %v767_v17, %v736_v40 }
 0x401   : > { %v714_v34 = vpop.permute.xlu1 %713  ;;  %v729_v35 = vpop.permute.xlu0 %728 }
 0x402   : > { %v738_v37 = vmul.f32 %v729_v35, %v2350_v44  ;;  %v735_v41 = vmul.f32 %v714_v34, %v2353_v45 }
 0x404   : > { %v786_v43 = vadd.f32 %v777_v18, %v738_v37 }
 0x405   : > { %v709_v36 = vpop.permute.xlu1 %708 }
 0x406   : > { %v762_v38 = vpop.permute.xlu0 %761  ;;  %v734_v57 = vmul.f32 %v709_v36, %v2371_v55 }
 0x407   : > { %v783_v46 = vadd.f32 %v762_v38, %v735_v41 }
 0x409   : > { %v724_v39 = vpop.permute.xlu1 %723  ;;  %v789_v44 = vpack.c.bf16 %v784_v49, %v783_v46 }
 0x40a   : > { %v737_v42 = vmul.f32 %v724_v39, %v2360_v50  ;;  %v757_v56 = vpop.permute.xlu0 %756 }
 0x40b   : > { %v782_v51 = vadd.f32 %v757_v56, %v734_v57 }
 0x40c   : > { %v785_v47 = vadd.f32 %v772_v8, %v737_v42 }
 0x40e   : > { %v752_v52 = vpop.permute.xlu1 %751  ;;  %v790_v53 = vpack.c.bf16 %v786_v43, %v785_v47  ;;  %v742_v54 = vpop.permute.xlu0 %741 }
 0x40f   : > { %v781_v58 = vadd.f32 %v752_v52, %v733_v48 }
 0x410   : > { %1872 = vmatprep.subr.bf16.mxu0 %v790_v53 }
 0x411   : > { %1873 = vmatpush3.bf16.msra.mxu0 %v790_v53  ;;  %v788_v60 = vpack.c.bf16 %v782_v51, %v781_v58 }
 0x412   : > { %1874 = vmatprep.subr.bf16.mxu0 %v789_v44 }
 0x413   : > { %v694_v45 = vpop.permute.xlu1 %693  ;;  %v825_v23 = vpop.permute.xlu0 %824 }
 0x414   : > { %v731_v61 = vmul.f32 %v694_v45, %v2383_v62  ;;  %v2038_v62 = vld [vmem:[%s2701_s1 + $0x20] sm:$0xff]  }
 0x415   : > { %1875 = vmatpush3.bf16.msra.mxu0 %v789_v44 }
 0x416   : > { %1876 = vmatprep.subr.bf16.mxu0 %v788_v60  ;;  %v779_v9 = vadd.f32 %v742_v54, %v731_v61 }
 0x417   : > { %v699_v50 = vpop.permute.xlu1 %698  ;;  %v837_v26 = vpop.permute.xlu0 %836 }
 0x418   : > { %v732_v63 = vmul.f32 %v699_v50, %v2378_v59  ;;  %v2037_v59 = vld [vmem:[%s2701_s1 + $0x18] sm:$0xff]  }
 0x419   : > { %1877 = vmatpush3.bf16.msra.mxu0 %v788_v60 }
 0x41b   : > { %v845_v28 = vpop.permute.xlu0 %844 }
 0x41c   : > { %v747_v0 = vpop.permute.xlu1 %746 }
 0x41d   : > { %v780_v55 = vadd.f32 %v747_v0, %v732_v63 }
 0x41f   : > { %v787_v10 = vpack.c.bf16 %v780_v55, %v779_v9  ;;  %v853_v30 = vpop.permute.xlu0 %852 }
 0x421   : > { %1878 = vmatprep.subr.bf16.mxu0 %v787_v10  ;;  %v829_v27 = vpop.permute.xlu1 %828 }
 0x422   : > { %1879 = vmatpush3.bf16.msra.mxu0 %v787_v10 }
 0x423   : > { %v821_v32 = vpop.permute.xlu0 %820 }
 0x425   : > { %1881 = vmatmul.mubr.msk.bf16.vlgmr.msra.gmra.mxu0 %vm312_vm0, %v2035_v11  ;;  %v833_v29 = vpop.permute.xlu1 %832 }
 0x426   : > { %1884 = vmatprep.mubr.msk.bf16.mxu0 %vm312_vm0, %v2036_v12 }
 0x427   : > { %v813_v2 = vpop.permute.xlu0 %812 }
 0x429   : > { %v841_v31 = vpop.permute.xlu1 %840 }
 0x42b   : > { %v805_v7 = vpop.permute.xlu0 %804 }
 0x42d   : > { %1885 = vmatmul.mubr.msk.bf16.gmra.mxu0 %vm312_vm0, %v2037_v59  ;;  %v849_v24 = vpop.permute.xlu1 %848 }
 0x42e   : > { %1888 = vmatprep.mubr.msk.bf16.mxu0 %vm312_vm0, %v2038_v62 }
 0x42f   : > { %v797_v33 = vpop.permute.xlu0 %796 }
 0x431   : > { %v817_v4 = vpop.permute.xlu1 %816 }
 0x433   : > { %v2589_v47 = vpop.permute.xlu0 %857 }
 0x435   : > { %1889 = vmatmul.mubr.msk.bf16.gmra.mxu0 %vm312_vm0, %v2039_v13  ;;  %v809_v17 = vpop.permute.xlu1 %808 }
 0x436   : > { %1892 = vmatprep.mubr.msk.bf16.mxu0 %vm312_vm0, %v2040_v14 }
 0x437   : > { %v863_v60 = vpop.permute.xlu0 %862 }
 0x439   : > { %v801_v37 = vpop.permute.xlu1 %800 }
 0x43b   : > { %v868_v11 = vpop.permute.xlu0 %867 }
 0x43d   : > { %1893 = vmatmul.mubr.msk.bf16.gmra.mxu0 %vm312_vm0, %v2041_v15  ;;  %v793_v52 = vpop.permute.xlu1 %792 }
 0x43e   : > { %1896 = vmatprep.mubr.msk.bf16.mxu0 %vm312_vm0, %v2042_v16 }
 0x445   : > { %1897 = vmatmul.mubr.msk.bf16.gmra.mxu0 %vm312_vm0, %v2043_v20 }
 0x446   : > { %1900 = vmatprep.mubr.msk.bf16.mxu0 %vm312_vm0, %v2044_v21  ;;  %v873_v21 = vpop.permute.xlu0 %872 }
 0x44d   : > { %1901 = vmatmul.mubr.msk.bf16.gmra.mxu0 %vm312_vm0, %v2045_v22 }
 0x4e5   : > { %v1882_v1 = vpop.f32.mrf.mxu0 }
 0x4e6   : > { %v1034_v49 = vadd.f32 %v1882_v1, %v801_v37 }
 0x4e7   : > { %v1025_v5 = vpop.f32.mrf.mxu0 }
 0x4e8   : > { %v1026_v58 = vadd.f32 %v1025_v5, %v793_v52 }
 0x4e9   : > { %v1883_v6 = vpop.f32.mrf.mxu0 }
 0x4ea   : > { %v1037_v43 = vadd.f32 %v1883_v6, %v805_v7 }
 0x4eb   : > { %v1028_v8 = vpop.f32.mrf.mxu0 }
 0x4ec   : > { %v1121_v56 = vpack.c.bf16 %v1037_v43, %v1034_v49  ;;  %v1029_v57 = vadd.f32 %v1028_v8, %v797_v33 }
 0x4ed   : > { %v1886_v18 = vpop.f32.mrf.mxu0 }
 0x4ee   : > { %v1050_v35 = vadd.f32 %v1886_v18, %v817_v4  ;;  %v1120_v61 = vpack.c.bf16 %v1029_v57, %v1026_v58 }
 0x4ef   : > { %v1041_v19 = vpop.f32.mrf.mxu0 }
 0x4f0   : > { %v1042_v39 = vadd.f32 %v1041_v19, %v809_v17 }
 0x4f1   : > { %v1887_v34 = vpop.f32.mrf.mxu0 }
 0x4f2   : > { %v1053_v36 = vadd.f32 %v1887_v34, %v821_v32 }
 0x4f3   : > { %v1044_v38 = vpop.f32.mrf.mxu0 }
 0x4f4   : > { %v1123_v40 = vpack.c.bf16 %v1053_v36, %v1050_v35  ;;  %v1045_v41 = vadd.f32 %v1044_v38, %v813_v2 }
 0x4f5   : > { %v1890_v42 = vpop.f32.mrf.mxu0 }
 0x4f6   : > { %v1122_v46 = vpack.c.bf16 %v1045_v41, %v1042_v39  ;;  %1904 = vmatprep.subr.bf16.mxu1 %v1123_v40  ;;  %v1066_v9 = vadd.f32 %v1890_v42, %v833_v29 }
 0x4f7   : > { %v1057_v48 = vpop.f32.mrf.mxu0  ;;  %1905 = vmatpush3.bf16.msra.mxu1 %v1123_v40 }
 0x4f8   : > { %1906 = vmatprep.subr.bf16.mxu1 %v1122_v46  ;;  %v1058_v51 = vadd.f32 %v1057_v48, %v825_v23 }
 0x4f9   : > { %v1891_v53 = vpop.f32.mrf.mxu0 }
 0x4fa   : > { %v1069_v54 = vadd.f32 %v1891_v53, %v837_v26 }
 0x4fb   : > { %v1060_v44 = vpop.f32.mrf.mxu0  ;;  %1907 = vmatpush3.bf16.msra.mxu1 %v1122_v46 }
 0x4fc   : > { %v1061_v45 = vadd.f32 %v1060_v44, %v829_v27  ;;  %1908 = vmatprep.subr.bf16.mxu1 %v1121_v56  ;;  %v1125_v10 = vpack.c.bf16 %v1069_v54, %v1066_v9 }
 0x4fd   : > { %v1894_v50 = vpop.f32.mrf.mxu0 }
 0x4fe   : > { %v1124_v63 = vpack.c.bf16 %v1061_v45, %v1058_v51  ;;  %v1082_v20 = vadd.f32 %v1894_v50, %v849_v24 }
 0x4ff   : > { %v1073_v0 = vpop.f32.mrf.mxu0  ;;  %1909 = vmatpush3.bf16.msra.mxu1 %v1121_v56 }
 0x500   : > { %1132 = vxpose.xlu1.c.b16.start [1/4] (short) %v1124_v63, 128  ;;  %1910 = vmatprep.subr.bf16.mxu1 %v1120_v61  ;;  %v1074_v59 = vadd.f32 %v1073_v0, %v841_v31 }
 0x501   : > { %v1895_v55 = vpop.f32.mrf.mxu0 }
 0x502   : > { %v1085_v14 = vadd.f32 %v1895_v55, %v853_v30 }
 0x503   : > { %v1076_v12 = vpop.f32.mrf.mxu0  ;;  %1911 = vmatpush3.bf16.msra.mxu1 %v1120_v61 }
 0x504   : > { %v1077_v62 = vadd.f32 %v1076_v12, %v845_v28  ;;  %1133 = vxpose.xlu1.c.b16.cont [2/4] (short) %v1125_v10, 128  ;;  %v1127_v23 = vpack.c.bf16 %v1085_v14, %v1082_v20 }
 0x505   : > { %v1898_v13 = vpop.f32.mrf.mxu0 }
 0x506   : > { %v1126_v15 = vpack.c.bf16 %v1077_v62, %v1074_v59  ;;  %v2591_v26 = vadd.f32 %v1898_v13, %v868_v11 }
 0x507   : > { %v1089_v16 = vpop.f32.mrf.mxu0 }
 0x508   : > { %1134 = vxpose.xlu1.c.b16.cont [3/4] (short) %v1126_v15, 128  ;;  %v1090_v4 = vadd.f32 %v1089_v16, %v2589_v47 }
 0x509   : > { %v1899_v22 = vpop.f32.mrf.mxu0 }
 0x50a   : > { %v2593_v27 = vadd.f32 %v1899_v22, %v873_v21 }
 0x50b   : > { %v1092_v1 = vpop.f32.mrf.mxu0 }
 0x50c   : > { %v1129_v29 = vpack.c.bf16 %v2593_v27, %v2591_v26  ;;  %1135 = vxpose.xlu1.c.b16.end [4/4] (short) %v1127_v23, 128 }
 0x510   : > { %2033 = vset.pattern.permute.xlu1 %v2172_v25  ;;  %v1093_v25 = vadd.f32 %v1092_v1, %v863_v60 }
 0x512   : > { %v1128_v5 = vpack.c.bf16 %v1093_v25, %v1090_v4 }
 0x520   : > { %1458 = vperm.xlu1 %2033, %v2521_v3  }
 0x562   : > { %v1140_v28 = vpop.trf.xlu1 }
 0x563   : > { %1912 = vmatprep.mubr.msk.bf16.mxu1 %vm312_vm0, %v1140_v28 }
 0x566   : > { %v1141_v30 = vpop.trf.xlu1 }
 0x567   : > { %1913 = vmatmul.mubr.msk.bf16.vlgmr.msra.gmra.mxu1 %vm312_vm0, %v1141_v30 }
 0x56a   : > { %v1142_v31 = vpop.trf.xlu1 }
 0x56b   : > { %1916 = vmatprep.mubr.msk.bf16.mxu1 %vm312_vm0, %v1142_v31 }
 0x56e   : > { %v1143_v32 = vpop.trf.xlu1 }
 0x56f   : > { %1917 = vmatmul.mubr.msk.bf16.gmra.mxu1 %vm312_vm0, %v1143_v32 }
 0x572   : > { %v1144_v24 = vpop.trf.xlu1 }
 0x573   : > { %1920 = vmatprep.mubr.msk.bf16.mxu1 %vm312_vm0, %v1144_v24 }
 0x576   : > { %v1145_v2 = vpop.trf.xlu1 }
 0x577   : > { %1921 = vmatmul.mubr.msk.bf16.gmra.mxu1 %vm312_vm0, %v1145_v2 }
 0x57a   : > { %v1146_v3 = vpop.trf.xlu1 }
 0x57b   : > { %1924 = vmatprep.mubr.msk.bf16.mxu1 %vm312_vm0, %v1146_v3 }
 0x57e   : > { %v1147_v6 = vpop.trf.xlu1 }
 0x57f   : > { %1925 = vmatmul.mubr.msk.bf16.gmra.mxu1 %vm312_vm0, %v1147_v6 }
 0x580   : > { %1944 = vmatprep.mubr.bf16.mxu1 %v1128_v5 }
 0x627   : > { %v1914_v7 = vpop.f32.mrf.mxu1 }
 0x629   : > { %v1206_v8 = vpop.f32.mrf.mxu1 }
 0x62b   : > { %v1915_v17 = vpop.f32.mrf.mxu1 }
 0x62d   : > { %v1209_v18 = vpop.f32.mrf.mxu1 }
 0x62f   : > { %v1918_v19 = vpop.f32.mrf.mxu1 }
 0x630   : > { %v1271_v43 = vmax.f32 %v1914_v7, %v1918_v19 }
 0x631   : > { %v1222_v33 = vpop.f32.mrf.mxu1 }
 0x632   : > { %v1269_v46 = vmax.f32 %v1206_v8, %v1222_v33 }
 0x633   : > { %v1919_v34 = vpop.f32.mrf.mxu1 }
 0x634   : > { %v1272_v41 = vmax.f32 %v1915_v17, %v1919_v34 }
 0x635   : > { %v1225_v35 = vpop.f32.mrf.mxu1 }
 0x636   : > { %v1270_v47 = vmax.f32 %v1209_v18, %v1225_v35 }
 0x637   : > { %v2608_v36 = vpop.f32.mrf.mxu1 }
 0x638   : > { %v1275_v52 = vmax.f32 %v1271_v43, %v2608_v36 }
 0x639   : > { %v1238_v37 = vpop.f32.mrf.mxu1 }
 0x63a   : > { %v1273_v53 = vmax.f32 %v1269_v46, %v1238_v37 }
 0x63b   : > { %v2610_v38 = vpop.f32.mrf.mxu1 }
 0x63c   : > { %v1276_v48 = vmax.f32 %v1272_v41, %v2610_v38 }
 0x63d   : > { %v2612_v39 = vpop.f32.mrf.mxu1 }
 0x63e   : > { %v1274_v56 = vmax.f32 %v1270_v47, %v2612_v39 }
 0x63f   : > { %v1926_v40 = vpop.f32.mrf.mxu1 }
 0x640   : > { %v1279_v58 = vmax.f32 %v1275_v52, %v1926_v40 }
 0x641   : > { %v1254_v42 = vpop.f32.mrf.mxu1 }
 0x642   : > { %v1277_v51 = vmax.f32 %v1273_v53, %v1254_v42 }
 0x643   : > { %v1927_v49 = vpop.f32.mrf.mxu1 }
 0x644   : > { %v1280_v57 = vmax.f32 %v1276_v48, %v1927_v49 }
 0x645   : > { %v1257_v44 = vpop.f32.mrf.mxu1 }
 0x646   : > { %v1278_v45 = vmax.f32 %v1274_v56, %v1257_v44  ;;  %v1282_v60 = vmax.f32 %v1279_v58, %v1280_v57 }
 0x648   : > { %v1281_v50 = vmax.f32 %v1277_v51, %v1278_v45 }
 0x64a   : > { %v1283_v61 = vmax.f32 %v1281_v50, %v1282_v60 }
 0x64c   : > { %v1284_v54 = vrot.slane %v1283_v61, 4 }
 0x64e   : > { %v1285_v63 = vmax.f32 %v1283_v61, %v1284_v54 }
 0x650   : > { %v1286_v0 = vrot.slane %v1285_v63, 2 }
 0x652   : > { %v1287_v9 = vmax.f32 %v1285_v63, %v1286_v0 }
 0x654   : > { %v1288_v55 = vrot.slane %v1287_v9, 1 }
 0x656   : > { %v1289_v10 = vmax.f32 %v1287_v9, %v1288_v55 }
 0x658   : > { %v1290_v11 = vsub.f32 %v1206_v8, %v1289_v10  ;;  %v1291_v12 = vsub.f32 %v1209_v18, %v1289_v10  ;;  %v1292_v59 = vsub.f32 %v1914_v7, %v1289_v10  ;;  %v1293_v62 = vsub.f32 %v1915_v17, %v1289_v10 }
 0x659   : > { %v1294_v15 = vsub.f32 %v1222_v33, %v1289_v10  ;;  %v1295_v21 = vsub.f32 %v1225_v35, %v1289_v10  ;;  %v1296_v22 = vsub.f32 %v1918_v19, %v1289_v10  ;;  %v1297_v23 = vsub.f32 %v1919_v34, %v1289_v10 }
 0x65a   : > { %v1306_v13 = vmul.f32 1.442695, %v1290_v11  ;;  %v1308_v14 = vmul.f32 1.442695, %v1291_v12  ;;  %v1310_v16 = vmul.f32 1.442695, %v1292_v59  ;;  %v1298_v28 = vsub.f32 %v1238_v37, %v1289_v10 }
 0x65b   : > { %v1312_v20 = vmul.f32 1.442695, %v1293_v62  ;;  %v1314_v30 = vmul.f32 1.442695, %v1294_v15  ;;  %v1302_v31 = vsub.f32 %v1254_v42, %v1289_v10  ;;  %v1316_v32 = vmul.f32 1.442695, %v1295_v21 }
 0x65c   : > { %2066 = vpow2.f32 %v1306_v13  ;;  %v1303_v24 = vsub.f32 %v1257_v44, %v1289_v10  ;;  %v1318_v2 = vmul.f32 1.442695, %v1296_v22  ;;  %v1320_v1 = vmul.f32 1.442695, %v1297_v23  ;;  %v878_v22 = vpop.permute.xlu0 %877 }
 0x65d   : > { %2068 = vpow2.f32 %v1308_v14  ;;  %v1304_v25 = vsub.f32 %v1926_v40, %v1289_v10  ;;  %v1322_v3 = vmul.f32 1.442695, %v1298_v28  ;;  %v1305_v4 = vsub.f32 %v1927_v49, %v1289_v10 }
 0x65e   : > { %2070 = vpow2.f32 %v1310_v16  ;;  %v1330_v5 = vmul.f32 1.442695, %v1302_v31  ;;  %v1299_v6 = vsub.f32 %v2612_v39, %v1289_v10  ;;  %v1332_v7 = vmul.f32 1.442695, %v1303_v24  ;;  %v1902_v16 = vpop.f32.mrf.mxu0 }
 0x65f   : > { %2072 = vpow2.f32 %v1312_v20  ;;  %v1300_v8 = vsub.f32 %v2608_v36, %v1289_v10  ;;  %v1334_v17 = vmul.f32 1.442695, %v1304_v25  ;;  %v1301_v18 = vsub.f32 %v2610_v38, %v1289_v10 }
 0x660   : > { %2074 = vpow2.f32 %v1314_v30  ;;  %v1336_v19 = vmul.f32 1.442695, %v1305_v4  ;;  %v1324_v34 = vmul.f32 1.442695, %v1299_v6  ;;  %v1105_v23 = vpop.f32.mrf.mxu0  ;;  %v883_v31 = vpop.permute.xlu0 %882 }
 0x661   : > { %2076 = vpow2.f32 %v1316_v32  ;;  %v1326_v37 = vmul.f32 1.442695, %v1300_v8  ;;  %v1328_v41 = vmul.f32 1.442695, %v1301_v18  ;;  %v2047_v8 = vld [vmem:[%s2702_s2 + $0x10] sm:$0xff]  }
 0x662   : > { %2078 = vpow2.f32 %v1318_v2  ;;  %v1903_v30 = vpop.f32.mrf.mxu0 }
 0x663   : > { %2080 = vpow2.f32 %v1320_v1  ;;  %v1106_v1 = vadd.f32 %v1105_v23, %v878_v22 }
 0x664   : > { %2082 = vpow2.f32 %v1322_v3  ;;  %v1108_v32 = vpop.f32.mrf.mxu0  ;;  %v888_v24 = vpop.permute.xlu0 %887 }
 0x665   : > { %2084 = vpow2.f32 %v1330_v5  ;;  %v1109_v2 = vadd.f32 %v1108_v32, %v883_v31  ;;  %v1114_v5 = vadd.f32 %v1902_v16, %v888_v24  ;;  %v2103_v32 = vld [vmem:[%s2259_s9 + $0x20] sm:$0xff] }
 0x666   : > { %2086 = vpow2.f32 %v1332_v7  ;;  %v2046_v7 = vld [vmem:[%s2702_s2] sm:$0xff]  }
 0x667   : > { %2088 = vpow2.f32 %v1334_v17  ;;  %v1130_v25 = vpack.c.bf16 %v1109_v2, %v1106_v1  ;;  %1960 = vmatprep.mubr.msk.bf16.mxu0 %vm312_vm0, %v2046_v7 }
 0x668   : > { %2090 = vpow2.f32 %v1336_v19  ;;  %v893_v3 = vpop.permute.xlu0 %892 }
 0x669   : > { %v2067_v33 = vpop.eup %2066  ;;  %2092 = vpow2.f32 %v1324_v34  ;;  %v1117_v4 = vadd.f32 %v1903_v30, %v893_v3  ;;  %v2102_v30 = vld [vmem:[%s2259_s9] sm:$0xff] }
 0x66a   : > { %v2069_v35 = vpop.eup %2068  ;;  %2094 = vpow2.f32 %v1326_v37 }
 0x66b   : > { %v2071_v40 = vpop.eup %2070  ;;  %v1338_v39 = vadd.f32 %v2069_v35, %v2067_v33  ;;  %v1359_v42 = vpack.c.bf16 %v2069_v35, %v2067_v33  ;;  %2096 = vpow2.f32 %v1328_v41  ;;  %v1131_v6 = vpack.c.bf16 %v1117_v4, %v1114_v5  ;;  %v2104_v4 = vld [vmem:[%s2259_s9 + $0x38] sm:$0xff] }
 0x66c   : > { %v2073_v43 = vpop.eup %2072 }
 0x66d   : > { %v1339_v36 = vadd.f32 %v2071_v40, %v1338_v39  ;;  %v1360_v46 = vpack.c.bf16 %v2073_v43, %v2071_v40  ;;  %v2075_v47 = vpop.eup %2074 }
 0x66e   : > { %v2077_v48 = vpop.eup %2076 }
 0x66f   : > { %v1340_v38 = vadd.f32 %v2073_v43, %v1339_v36  ;;  %v2079_v52 = vpop.eup %2078  ;;  %v1361_v28 = vpack.c.bf16 %v2077_v48, %v2075_v47 }
 0x670   : > { %v2081_v53 = vpop.eup %2080 }
 0x671   : > { %v1341_v49 = vadd.f32 %v2075_v47, %v1340_v38  ;;  %v2083_v57 = vpop.eup %2082  ;;  %v1362_v21 = vpack.c.bf16 %v2081_v53, %v2079_v52 }
 0x672   : > { %v2085_v44 = vpop.eup %2084 }
 0x673   : > { %v1342_v56 = vadd.f32 %v2077_v48, %v1341_v49  ;;  %v2087_v51 = vpop.eup %2086 }
 0x674   : > { %v2089_v45 = vpop.eup %2088  ;;  %v1365_v55 = vpack.c.bf16 %v2087_v51, %v2085_v44 }
 0x675   : > { %v1343_v58 = vadd.f32 %v2079_v52, %v1342_v56  ;;  %v2091_v50 = vpop.eup %2090 }
 0x676   : > { %v1366_v54 = vpack.c.bf16 %v2091_v50, %v2089_v45  ;;  %v2093_v63 = vpop.eup %2092 }
 0x677   : > { %v1344_v60 = vadd.f32 %v2081_v53, %v1343_v58  ;;  %v2095_v0 = vpop.eup %2094  ;;  %v1363_v14 = vpack.c.bf16 %v2093_v63, %v2083_v57 }
 0x678   : > { %1928 = vmatprep.subr.bf16.mxu1 %v1366_v54  ;;  %v2097_v10 = vpop.eup %2096 }
 0x679   : > { %v1345_v61 = vadd.f32 %v2083_v57, %v1344_v60  ;;  %1929 = vmatpush3.bf16.msra.mxu1 %v1366_v54  ;;  %v1364_v59 = vpack.c.bf16 %v2097_v10, %v2095_v0  ;;  %v1447_v60 = vpop.permute.xlu0 %1446 }
 0x67a   : > { %1930 = vmatprep.subr.bf16.mxu1 %v1365_v55 }
 0x67b   : > { %v1346_v9 = vadd.f32 %v2093_v63, %v1345_v61 }
 0x67d   : > { %v1347_v11 = vadd.f32 %v2095_v0, %v1346_v9  ;;  %1931 = vmatpush3.bf16.msra.mxu1 %v1365_v55 }
 0x67e   : > { %1932 = vmatprep.subr.bf16.mxu1 %v1364_v59 }
 0x67f   : > { %v1348_v12 = vadd.f32 %v2097_v10, %v1347_v11 }
 0x681   : > { %v1349_v62 = vadd.f32 %v2085_v44, %v1348_v12  ;;  %1933 = vmatpush3.bf16.msra.mxu1 %v1364_v59  ;;  %v1459_v12 = vpop.permute.xlu1 %1458 }
 0x682   : > { %1934 = vmatprep.subr.bf16.mxu1 %v1363_v14 }
 0x683   : > { %v1350_v13 = vadd.f32 %v2087_v51, %v1349_v62  ;;  %v2048_v51 = vld [vmem:[%s2702_s2 + $0x8] sm:$0xff]  }
 0x685   : > { %v1351_v15 = vadd.f32 %v2089_v45, %v1350_v13  ;;  %1935 = vmatpush3.bf16.msra.mxu1 %v1363_v14  ;;  %v2049_v45 = vld [vmem:[%s2702_s2 + $0x18] sm:$0xff]   ;;  %v2100_v13 = vld [vmem:[%s2259_s9 + $0x10] sm:$0xff] }
 0x686   : > { %1936 = vmatprep.subr.bf16.mxu1 %v1362_v21 }
 0x687   : > { %v1352_v20 = vadd.f32 %v2091_v50, %v1351_v15  ;;  %v1451_v50 = vpop.permute.xlu0 %1450  ;;  %v2101_v15 = vld [vmem:[%s2259_s9 + $0x30] sm:$0xff] }
 0x689   : > { %1937 = vmatpush3.bf16.msra.mxu1 %v1362_v21  ;;  %v1353_v26 = vrot.slane %v1352_v20, 4 }
 0x68a   : > { %1938 = vmatprep.subr.bf16.mxu1 %v1361_v28 }
 0x68b   : > { %v1354_v27 = vadd.f32 %v1353_v26, %v1352_v20  ;;  %v1455_v61 = vpop.permute.xlu0 %1454 }
 0x68d   : > { %1939 = vmatpush3.bf16.msra.mxu1 %v1361_v28 }
 0x68e   : > { %1940 = vmatprep.subr.bf16.mxu1 %v1360_v46 }
 0x68f   : > { %v1463_v54 = vpop.permute.xlu0 %1462 }
 0x691   : > { %1941 = vmatpush3.bf16.msra.mxu1 %v1360_v46 }
 0x692   : > { %1942 = vmatprep.subr.bf16.mxu1 %v1359_v42 }
 0x693   : > { %v1467_v63 = vpop.permute.xlu0 %1466 }
 0x695   : > { %1943 = vmatpush3.bf16.msra.mxu1 %v1359_v42 }
 0x697   : > { %v1471_v0 = vpop.permute.xlu0 %1470 }
 0x698   : > { %1945 = vmatmul.mubr.bf16.vlgmr.msra.gmra.mxu1 %v1129_v29  ;;  %v1355_v29 = vrot.slane %v1354_v27, 2 }
 0x699   : > { %1948 = vmatprep.mubr.bf16.mxu1 %v1130_v25 }
 0x69a   : > { %v1356_v17 = vadd.f32 %v1355_v29, %v1354_v27  ;;  %v2106_v27 = vld [vmem:[%s2259_s9 + $0x8] sm:$0xff] }
 0x69b   : > { %v1475_v22 = vpop.permute.xlu0 %1474 }
 0x69c   : > { %v1357_v18 = vrot.slane %v1356_v17, 1 }
 0x69e   : > { %v1358_v19 = vadd.f32 %v1357_v18, %v1356_v17  ;;  %v2107_v17 = vld [vmem:[%s2259_s9 + $0x28] sm:$0xff] }
 0x6a0   : > { %1949 = vmatmul.mubr.bf16.gmra.mxu1 %v1131_v6  ;;  %2098 = vrcp.f32 %v1358_v19 }
 0x6a1   : > { %1964 = vmatprep.mubr.msk.bf16.mxu1 %vm312_vm0, %v2047_v8  ;;  %v2105_v8 = vld [vmem:[%s2259_s9 + $0x18] sm:$0xff] }
 0x6ad   : > { %v2099_v39 = vpop.eup %2098 }
 0x758   : > { %v1946_v33 = vpop.f32.mrf.mxu1 }
 0x759   : > { %v1435_v53 = vmul.f32 %v2099_v39, %v1946_v33 }
 0x75a   : > { %v1401_v34 = vpop.f32.mrf.mxu1 }
 0x75b   : > { %v1433_v44 = vmul.f32 %v2099_v39, %v1401_v34 }
 0x75c   : > { %v1947_v35 = vpop.f32.mrf.mxu1 }
 0x75d   : > { %v1436_v49 = vmul.f32 %v2099_v39, %v1947_v35 }
 0x75e   : > { %v1404_v37 = vpop.f32.mrf.mxu1 }
 0x75f   : > { %v1442_v56 = vpack.c.bf16 %v1436_v49, %v1435_v53  ;;  %v1434_v57 = vmul.f32 %v2099_v39, %v1404_v37 }
 0x760   : > { %v1950_v40 = vpop.f32.mrf.mxu1 }
 0x761   : > { %v1439_v43 = vmul.f32 %v2099_v39, %v1950_v40  ;;  %v1441_v58 = vpack.c.bf16 %v1434_v57, %v1433_v44 }
 0x762   : > { %v1417_v41 = vpop.f32.mrf.mxu1 }
 0x763   : > { %v1437_v38 = vmul.f32 %v2099_v39, %v1417_v41 }
 0x764   : > { %v1951_v42 = vpop.f32.mrf.mxu1 }
 0x765   : > { %v1440_v36 = vmul.f32 %v2099_v39, %v1951_v42 }
 0x766   : > { %v1420_v46 = vpop.f32.mrf.mxu1 }
 0x767   : > { %v1444_v47 = vpack.c.bf16 %v1440_v36, %v1439_v43  ;;  %v1438_v48 = vmul.f32 %v2099_v39, %v1420_v46 }
 0x769   : > { %v1443_v52 = vpack.c.bf16 %v1438_v48, %v1437_v38  ;;  %1952 = vmatprep.subr.bf16.mxu0 %v1444_v47  ;;  %1968 = vmatprep.subr.bf16.mxu1 %v1444_v47 }
 0x76a   : > { %1953 = vmatpush3.bf16.msra.mxu0 %v1444_v47  ;;  %1972 = vmatpush3.bf16.msra.mxu1 %v1444_v47 }
 0x76b   : > { %1954 = vmatprep.subr.bf16.mxu0 %v1443_v52  ;;  %1969 = vmatprep.subr.bf16.mxu1 %v1443_v52 }
 0x76e   : > { %1955 = vmatpush3.bf16.msra.mxu0 %v1443_v52  ;;  %1973 = vmatpush3.bf16.msra.mxu1 %v1443_v52 }
 0x76f   : > { %1956 = vmatprep.subr.bf16.mxu0 %v1442_v56  ;;  %1970 = vmatprep.subr.bf16.mxu1 %v1442_v56 }
 0x772   : > { %1957 = vmatpush3.bf16.msra.mxu0 %v1442_v56  ;;  %1974 = vmatpush3.bf16.msra.mxu1 %v1442_v56 }
 0x773   : > { %1958 = vmatprep.subr.bf16.mxu0 %v1441_v58  ;;  %1971 = vmatprep.subr.bf16.mxu1 %v1441_v58 }
 0x776   : > { %1959 = vmatpush3.bf16.msra.mxu0 %v1441_v58  ;;  %1975 = vmatpush3.bf16.msra.mxu1 %v1441_v58 }
 0x779   : > { %1961 = vmatmul.mubr.msk.bf16.vlgmr.msra.gmra.mxu0 %vm312_vm0, %v2048_v51  ;;  %1965 = vmatmul.mubr.msk.bf16.vlgmr.msra.gmra.mxu1 %vm312_vm0, %v2049_v45 }
 0x839   : > { %v1962_v9 = vpop.f32.mrf.mxu0  ;;  %v1966_v55 = vpop.f32.mrf.mxu1 }
 0x83a   : > { %v1552_v10 = vadd.f32 %v1962_v9, %v1455_v61  ;;  %v1568_v11 = vadd.f32 %v1966_v55, %v1471_v0 }
 0x83b   : > { %v1543_v59 = vpop.f32.mrf.mxu0  ;;  %v1559_v62 = vpop.f32.mrf.mxu1 }
 0x83c   : > { %v1576_v14 = vadd.f32 %v2100_v13, %v1552_v10  ;;  %v1580_v16 = vadd.f32 %v2101_v15, %v1568_v11  ;;  %v1544_v20 = vadd.f32 %v1543_v59, %v1447_v60  ;;  %v1560_v21 = vadd.f32 %v1559_v62, %v1463_v54 }
 0x83d   : > { %v1963_v23 = vpop.f32.mrf.mxu0  ;;  %v1967_v28 = vpop.f32.mrf.mxu1 }
 0x83e   : > { %1584 = vst [vmem:[%s217_s25 + $0x10] sm:$0xff] %v1576_v14  ;;  %1588 = vst [vmem:[%s217_s25 + $0x30] sm:$0xff] %v1580_v16  ;;  %v1574_v31 = vadd.f32 %v2102_v30, %v1544_v20  ;;  %v1578_v24 = vadd.f32 %v2103_v32, %v1560_v21  ;;  %v1571_v2 = vadd.f32 %v1967_v28, %v1475_v22 }
 0x83f   : > { %v1555_v1 = vadd.f32 %v1963_v23, %v1459_v12  ;;  %v1546_v25 = vpop.f32.mrf.mxu0  ;;  %v1562_v3 = vpop.f32.mrf.mxu1 }
 0x840   : > { %1582 = vst [vmem:[%s217_s25] sm:$0xff] %v1574_v31  ;;  %1586 = vst [vmem:[%s217_s25 + $0x20] sm:$0xff] %v1578_v24  ;;  %v1581_v5 = vadd.f32 %v2104_v4, %v1571_v2  ;;  %v1547_v6 = vadd.f32 %v1546_v25, %v1451_v50  ;;  %v1563_v7 = vadd.f32 %v1562_v3, %v1467_v63 }
 0x841   : > { %v1577_v26 = vadd.f32 %v2105_v8, %v1555_v1 }
 0x842   : > { %1589 = vst [vmem:[%s217_s25 + $0x38] sm:$0xff] %v1581_v5  ;;  %v1575_v29 = vadd.f32 %v2106_v27, %v1547_v6  ;;  %v1579_v18 = vadd.f32 %v2107_v17, %v1563_v7 }
 0x843   : > { %1585 = vst [vmem:[%s217_s25 + $0x18] sm:$0xff] %v1577_v26 }
 0x844   : > { %1583 = vst [vmem:[%s217_s25 + $0x8] sm:$0xff] %v1575_v29  ;;  %1587 = vst [vmem:[%s217_s25 + $0x28] sm:$0xff] %v1579_v18 }
 0x845   : > { %2121 = shalt.err (!%p2118_p3)
}
 0x846   : > { %s2122_s9 = scalar_lea.hbm %s2652_s8, 1024  ;;  %s2126_s16 = scalar_lea.hbm %s2705_s5, 4096 }
 0x847   : > { %p2123_p4 = scmp.ne.s32.totalorder %s2652_s8, %s2122_s9  ;;  %p2127_p9 = scmp.lt.s32.totalorder %s2652_s8, %s2705_s5 }
 0x848   : > { %p2128_p10 = scmp.lt.s32.totalorder %s2126_s16, %s2122_s9 }
 0x849   : > { %p2124_p7 = pnand %p2123_p4, %p2244_p5 }
 0x84a   : > { %p2129_p11 = por %p2128_p10, %p2127_p9 }
 0x84b   : > { %p2125_p8 = pneg %p2124_p7 }
 0x84d   : > { %p2130_p12 = pnand %p2129_p11, %p2125_p8 }
 0x84f   : > { %2133 = shalt.err (!%p2130_p12)
}
 0x850   : > { %s2174_s25 = smov 128   ;;  %s2175_s26 = smov 8  }
 0x851   : > { %1976 = dma.vmem_to_hbm [thread:$0]  (%p2244_p5), %s2654_s30, 1024, %s2652_s8, %s2660_s22, %s2174_s25, %s2174_s25, %s2175_s26  }
 0x852 PF: > { %p1982_p13 = scmp.ge.s32.totalorder %s2168_s21, 2  ;;  %s1619_s6 = sand.u32 1, %s2156_s18  }
 0x853   : > { %s1620_s7 = scalar_lea.sflag [#allocation3], %s1619_s6 }
 0x854   : > { %p1979_p0 = pnand %p1982_p13, %p2248_p6 }
 0x856   : > { %p1980_p1 = pneg %p1979_p0 }
 0x858   : > { %2151 = dma.done.wait (%p1980_p1), %s1620_s7, 1024  }
 0x859   : > { %2153 = vsyncadd (%p1980_p1), %s1620_s7, 4294966272  ;;  %p15_p2 = scmp.ge.s32.totalorder %s2231_s24, 6   ;;  %s2708_s18 = smov %s2160_s19 }
 0x85a   : > { %s2709_s19 = smov %s2164_s20  ;;  %s2710_s20 = smov %s2242_s27 }
 0x85b   : > { %s2711_s21 = smov %s2231_s24  ;;  %17 = sbr.rel (!%p15_p2) target bundleno = 3 (0x3), region = 75 }
 0x860   :  { %1625 = vsyncpa [#allocation3], 1 }
 0x861   :  { %1627 = vsyncpa [#allocation3 + $0x1], 1 }

</bundles_post_ra>
